<compile_context>
chip_gen: v5e
topology: v5e:2x2
jax: 0.10.0
libtpu: 0.0.40
codegen_flags: <defaults>
</compile_context>

<pallas_src>
import functools

import jax
import jax.numpy as jnp
import numpy as np
from jax.experimental import pallas as pl
from jax.experimental.pallas import tpu as pltpu

LANE = 128
_VMEM_LIMIT_BYTES = 32 * 1024 * 1024   # well above per-block needs, <= all chips


def _round_up(x, m):
    return (x + m - 1) // m * m


# ----------------------------------------------------------------------------
# Pallas kernels
# ----------------------------------------------------------------------------
def _matmul_shift_kernel(x_ref, w_ref, shift_ref, o_ref, *, apply_relu):
    """o = maybe_relu(x @ w + shift).  BN scale is pre-folded into w, the conv
    bias (and BN shift) into shift, so the VPU epilogue is a single add."""
    y = jnp.dot(x_ref[...], w_ref[...], preferred_element_type=jnp.float32)
    y = y + shift_ref[...]                       # (TM, Npad) + (1, Npad)
    if apply_relu:
        y = jnp.maximum(y, 0.0)
    o_ref[...] = y.astype(o_ref.dtype)


def fused_matmul(x, w, shift, *, apply_relu, tile_m_max=512):
    """Conv-as-matmul hot path.  Grid over M rows (double-buffered, 'parallel'
    so v7x's 2 TensorCores split it); N zero-padded to a lane-dense multiple of
    128; padded rows/cols sliced off before returning."""
    M, K = x.shape
    K2, N = w.shape
    assert K == K2
    n_pad = _round_up(N, LANE)
    # bf16 vregs pack [16,128] along sublanes -> use 16-row alignment for bf16.
    align = 16 if x.dtype == jnp.bfloat16 else 8
    tile_m = min(tile_m_max, _round_up(M, align))
    m_pad = _round_up(M, tile_m)
    if m_pad != M:
        x = jnp.pad(x, ((0, m_pad - M), (0, 0)))
    if n_pad != N:
        w = jnp.pad(w, ((0, 0), (0, n_pad - N)))
        shift = jnp.pad(shift, ((0, 0), (0, n_pad - N)))

    kernel = functools.partial(_matmul_shift_kernel, apply_relu=apply_relu)
    out = pl.pallas_call(
        kernel,
        out_shape=jax.ShapeDtypeStruct((m_pad, n_pad), jnp.float32),
        grid=(m_pad // tile_m,),
        in_specs=[
            pl.BlockSpec((tile_m, K), lambda i: (i, 0)),
            pl.BlockSpec((K, n_pad), lambda i: (0, 0)),
            pl.BlockSpec((1, n_pad), lambda i: (0, 0)),
        ],
        out_specs=pl.BlockSpec((tile_m, n_pad), lambda i: (i, 0)),
        compiler_params=pltpu.CompilerParams(
            dimension_semantics=("parallel",),
            vmem_limit_bytes=_VMEM_LIMIT_BYTES),
    )(x, w, shift)
    return out[:M, :N]


def _head_kernel(x_ref, w1_ref, b1_ref, w2_ref, b2_ref, o_ref):
    """Fused: mean over axis 1 (f32), then Linear -> Linear (no activation,
    matching nn.Sequential(Linear, Linear)).  Hidden/class dims are 128-padded
    by the wrapper so both matmul outputs are lane-dense."""
    xm = jnp.mean(x_ref[...].astype(jnp.float32), axis=1)             # (B, 512)
    h = jnp.dot(xm.astype(w1_ref.dtype), w1_ref[...],
                preferred_element_type=jnp.float32) + b1_ref[...]
    y = jnp.dot(h.astype(w2_ref.dtype), w2_ref[...],
                preferred_element_type=jnp.float32) + b2_ref[...]
    o_ref[...] = y.astype(o_ref.dtype)


def head(x_bkf, w1, b1, w2, b2):
    # TODO(synk): tile over B (sublane-multiples of 8) if batch grows large;
    # whole-array blocks are fine at toy batch sizes.
    B, K, F = x_bkf.shape
    H = w1.shape[1]
    C = w2.shape[1]
    h_pad = _round_up(H, LANE)
    c_pad = _round_up(C, LANE)
    w1p = jnp.pad(w1, ((0, 0), (0, h_pad - H)))
    b1p = jnp.pad(b1, ((0, 0), (0, h_pad - H)))
    w2p = jnp.pad(w2, ((0, h_pad - H), (0, c_pad - C)))
    b2p = jnp.pad(b2, ((0, 0), (0, c_pad - C)))
    out = pl.pallas_call(
        _head_kernel,
        out_shape=jax.ShapeDtypeStruct((B, c_pad), jnp.float32),
        in_specs=[pl.BlockSpec((B, K, F), lambda: (0, 0, 0)),
                  pl.BlockSpec((F, h_pad), lambda: (0, 0)),
                  pl.BlockSpec((1, h_pad), lambda: (0, 0)),
                  pl.BlockSpec((h_pad, c_pad), lambda: (0, 0)),
                  pl.BlockSpec((1, c_pad), lambda: (0, 0))],
        out_specs=pl.BlockSpec((B, c_pad), lambda: (0, 0)),
        compiler_params=pltpu.CompilerParams(
            vmem_limit_bytes=_VMEM_LIMIT_BYTES),
    )(x_bkf, w1p, b1p, w2p, b2p)
    return out[:, :C]


# ----------------------------------------------------------------------------
# Glue: im2col (data movement only; the matmul runs in the Pallas kernel)
# ----------------------------------------------------------------------------
def im2col(x_nhwc, kh, kw, stride, pad):
    if pad:
        x_nhwc = jnp.pad(x_nhwc, ((0, 0), (pad, pad), (pad, pad), (0, 0)))
    B, Hp, Wp, C = x_nhwc.shape
    Ho = (Hp - kh) // stride + 1
    Wo = (Wp - kw) // stride + 1
    cols = []
    for i in range(kh):
        for j in range(kw):
            patch = jax.lax.slice(
                x_nhwc, (0, i, j, 0),
                (B, i + (Ho - 1) * stride + 1, j + (Wo - 1) * stride + 1, C),
                (1, stride, stride, 1))
            cols.append(patch)
    patches = jnp.concatenate(cols, axis=-1)            # (B, Ho, Wo, kh*kw*C)
    return patches.reshape(B * Ho * Wo, kh * kw * C), (B, Ho, Wo)


def _conv_w_to_mat(w_oihw):
    """PyTorch (Cout, Cin, KH, KW) -> im2col weight matrix (KH*KW*Cin, Cout)."""
    cout = w_oihw.shape[0]
    return jnp.transpose(w_oihw, (2, 3, 1, 0)).reshape(-1, cout)


# ----------------------------------------------------------------------------
# Parameters (deterministic, shapes follow the PyTorch __init__)
# ----------------------------------------------------------------------------
def init_params(key, in_c, channel_list, pool_option, hidden, num_classes):
    keys = iter(jax.random.split(key, 32))
    p = {}
    p['conv1_w'] = 0.1 * jax.random.normal(next(keys), (channel_list[0], in_c, 3, 3))
    p['conv1_b'] = 0.1 * jax.random.normal(next(keys), (channel_list[0],))
    convs = []
    for i in range(1, len(channel_list)):
        cin, cout = channel_list[i - 1], channel_list[i]
        convs.append(dict(
            w=0.1 * jax.random.normal(next(keys), (cout, cin, 3, 3)),
            b=0.1 * jax.random.normal(next(keys), (cout,)),
            gamma=1.0 + 0.1 * jax.random.normal(next(keys), (cout,)),
            beta=0.1 * jax.random.normal(next(keys), (cout,)),
            rmean=0.1 * jax.random.normal(next(keys), (cout,)),
            rvar=jnp.abs(1.0 + 0.1 * jax.random.normal(next(keys), (cout,))),
        ))
    p['convs'] = convs
    fc_in = pool_option[0] * pool_option[1] * channel_list[-1]   # must equal 512
    p['fc1_w'] = 0.1 * jax.random.normal(next(keys), (hidden, fc_in))
    p['fc1_b'] = 0.1 * jax.random.normal(next(keys), (hidden,))
    p['fc2_w'] = 0.1 * jax.random.normal(next(keys), (num_classes, hidden))
    p['fc2_b'] = 0.1 * jax.random.normal(next(keys), (num_classes,))
    return p


# ----------------------------------------------------------------------------
# Forward (mirrors V2ConvNet.forward with return_feats=True, eval mode)
# ----------------------------------------------------------------------------
def v2convnet_forward(params, x_nchw, *, eps=1e-5, compute_dtype=jnp.float32):
    B = x_nchw.shape[0]

    # --- feats = self.conv(x)  (NHWC inside, fused Pallas matmul kernels) ---
    h = jnp.transpose(x_nchw, (0, 2, 3, 1)).astype(jnp.float32)   # NCHW -> NHWC

    # layer1: Conv2d k3 s1 p0 + bias, no BN / ReLU (matches nn.Sequential).
    cout = params['conv1_w'].shape[0]
    w_mat = _conv_w_to_mat(params['conv1_w'])
    shift = params['conv1_b'].reshape(1, -1)
    cols, (b_, ho, wo) = im2col(h, 3, 3, stride=1, pad=0)
    y = fused_matmul(cols.astype(compute_dtype), w_mat.astype(compute_dtype),
                     shift.astype(jnp.float32), apply_relu=False)
    h = y.reshape(b_, ho, wo, cout)

    # conv k3 s2 p1 + BatchNorm(folded) + Dropout(identity, eval) + ReLU
    for layer in params['convs']:
        cout = layer['w'].shape[0]
        scale = layer['gamma'] / jnp.sqrt(layer['rvar'] + eps)
        w_mat = _conv_w_to_mat(layer['w']) * scale[None, :]          # fold BN scale
        shift = ((layer['b'] - layer['rmean']) * scale
                 + layer['beta']).reshape(1, -1)                     # fold bias+BN shift
        cols, (b_, ho, wo) = im2col(h, 3, 3, stride=2, pad=1)
        y = fused_matmul(cols.astype(compute_dtype), w_mat.astype(compute_dtype),
                         shift.astype(jnp.float32), apply_relu=True)
        h = y.reshape(b_, ho, wo, cout)

    # PyTorch returns feats in NCHW; keep that layout for exact semantics.
    feats = jnp.transpose(h, (0, 3, 1, 2))

    # --- x = x.view(B, 512, -1).mean(2); x = self.fc(x)  (pools RAW input) ---
    assert (x_nchw.size // B) % 512 == 0
    x_flat = x_nchw.reshape(B, 512, -1)                    # NCHW flatten order
    x_bkf = jnp.transpose(x_flat, (0, 2, 1)).astype(jnp.float32)   # (B, K, 512) lane-dense
    logits = head(x_bkf,
                  params['fc1_w'].T.astype(compute_dtype),
                  params['fc1_b'].reshape(1, -1).astype(jnp.float32),
                  params['fc2_w'].T.astype(compute_dtype),
                  params['fc2_b'].reshape(1, -1).astype(jnp.float32))
    return logits, feats


# ----------------------------------------------------------------------------
# Pure-JAX reference (for correctness check only)
# ----------------------------------------------------------------------------
def reference_forward(params, x_nchw, eps=1e-5):
    dn = ('NCHW', 'OIHW', 'NCHW')
    h = jax.lax.conv_general_dilated(x_nchw, params['conv1_w'], (1, 1), 'VALID',
                                     dimension_numbers=dn)
    h = h + params['conv1_b'][None, :, None, None]
    for layer in params['convs']:
        h = jax.lax.conv_general_dilated(h, layer['w'], (2, 2), ((1, 1), (1, 1)),
                                         dimension_numbers=dn)
        h = h + layer['b'][None, :, None, None]
        scale = layer['gamma'] / jnp.sqrt(layer['rvar'] + eps)
        shift = layer['beta'] - layer['rmean'] * scale
        h = jnp.maximum(h * scale[None, :, None, None] + shift[None, :, None, None], 0.0)
    feats = h
    B = x_nchw.shape[0]
    xm = x_nchw.reshape(B, 512, -1).mean(2)
    logits = (xm @ params['fc1_w'].T + params['fc1_b']) @ params['fc2_w'].T + params['fc2_b']
    return logits, feats


# ----------------------------------------------------------------------------
if __name__ == "__main__":
    # config chosen so that pool[0]*pool[1]*channel_list[-1] == 512 == fc input,
    # and in_c*H*W is divisible by 512 (required by x.view(B, 512, -1)).
    B, in_c, H, W = 2, 4, 16, 16
    config = dict(channel_list=[8, 32], pool_option=(4, 4),
                  hidden_dim=32, dropout=0.1)
    num_classes = 10

    key = jax.random.PRNGKey(0)
    kx, kp = jax.random.split(key)
    x = jax.random.normal(kx, (B, in_c, H, W), jnp.float32)       # NCHW like PyTorch
    params = init_params(kp, in_c, config['channel_list'], config['pool_option'],
                         config['hidden_dim'], num_classes)

    ref_logits, ref_feats = reference_forward(params, x)

    # f32 MXU-operand path: tight check (primary correctness gate).
    fwd_f32 = jax.jit(functools.partial(v2convnet_forward, compute_dtype=jnp.float32))
    logits, feats = fwd_f32(params, x)
    logits = jax.block_until_ready(logits)
    feats = jax.block_until_ready(feats)
    assert logits.shape == (B, num_classes)
    assert feats.shape == (B, config['channel_list'][-1], 7, 7)
    np.testing.assert_allclose(np.asarray(logits), np.asarray(ref_logits),
                               rtol=1e-4, atol=1e-4)
    np.testing.assert_allclose(np.asarray(feats), np.asarray(ref_feats),
                               rtol=1e-4, atol=1e-4)

    # bf16 MXU-operand path (v6e/v7x fast path; f32 accumulation + f32 epilogue):
    # loose check against the f32 reference.
    fwd_bf16 = jax.jit(functools.partial(v2convnet_forward, compute_dtype=jnp.bfloat16))
    logits_b, feats_b = fwd_bf16(params, x)
    logits_b = jax.block_until_ready(logits_b)
    feats_b = jax.block_until_ready(feats_b)
    np.testing.assert_allclose(np.asarray(logits_b), np.asarray(ref_logits),
                               rtol=1e-1, atol=1e-1)
    np.testing.assert_allclose(np.asarray(feats_b), np.asarray(ref_feats),
                               rtol=1e-1, atol=1e-1)

    print("KERNEL_OK")
</pallas_src>

<mosaic_0001>
module attributes {stable_mosaic.version = 11 : i64} {
  func.func @_matmul_shift_kernel(%arg0: i32, %arg1: memref<392x36xf32, #tpu.memory_space<vmem>>, %arg2: memref<36x128xf32, #tpu.memory_space<vmem>>, %arg3: memref<1x128xf32, #tpu.memory_space<vmem>>, %arg4: memref<392x128xf32, #tpu.memory_space<vmem>>) attributes {dimension_semantics = [#tpu.dimension_semantics<parallel>], iteration_bounds = array<i64: 1>, scalar_prefetch = 0 : i64, scratch_operands = 0 : i64, tpu.core_type = #tpu.core_type<tc>, window_params = [{transform_indices = @transform_0, window_bounds = array<i64: 392, 36>}, {pipeline_mode = #tpu.pipeline_mode<synchronous>, transform_indices = @transform_1, window_bounds = array<i64: 36, 128>}, {pipeline_mode = #tpu.pipeline_mode<synchronous>, transform_indices = @transform_2, window_bounds = array<i64: 1, 128>}, {transform_indices = @transform_3, window_bounds = array<i64: 392, 128>}]} {
    %c0 = arith.constant 0 : index
    %c0_0 = arith.constant 0 : index
    %0 = vector.load %arg1[%c0, %c0_0] : memref<392x36xf32, #tpu.memory_space<vmem>>, vector<392x36xf32>
    %c0_1 = arith.constant 0 : index
    %c0_2 = arith.constant 0 : index
    %1 = vector.load %arg2[%c0_1, %c0_2] : memref<36x128xf32, #tpu.memory_space<vmem>>, vector<36x128xf32>
    %cst = arith.constant dense<0.000000e+00> : vector<392x128xf32>
    %2 = tpu.matmul %0, %1, %cst {dimension_numbers = #tpu.dot_dimension_numbers<[1], [0], [0], [1], [0, 0, 1, 1], [], []>} : vector<392x36xf32>, vector<36x128xf32>, vector<392x128xf32> -> vector<392x128xf32>
    %c0_3 = arith.constant 0 : index
    %c0_4 = arith.constant 0 : index
    %3 = vector.load %arg3[%c0_3, %c0_4] : memref<1x128xf32, #tpu.memory_space<vmem>>, vector<1x128xf32>
    %4 = vector.broadcast %3 : vector<1x128xf32> to vector<392x128xf32>
    %5 = arith.addf %2, %4 : vector<392x128xf32>
    %c0_5 = arith.constant 0 : index
    %c0_6 = arith.constant 0 : index
    %6 = vector.load %arg4[%c0_5, %c0_6] : memref<392x128xf32, #tpu.memory_space<vmem>>, vector<392x128xf32>
    tpu.vector_store %arg4[%c0_5, %c0_6], %5 {strides = array<i32>} : memref<392x128xf32, #tpu.memory_space<vmem>>, vector<392x128xf32>,
    return
  }
  func.func @transform_0(%arg0: i32) -> (i32, i32) {
    %c0_i32 = arith.constant 0 : i32
    %c0_i32_0 = arith.constant 0 : i32
    return %arg0, %c0_i32 : i32, i32
  }
  func.func @transform_1(%arg0: i32) -> (i32, i32) {
    %c0_i32 = arith.constant 0 : i32
    %c0_i32_0 = arith.constant 0 : i32
    %c0_i32_1 = arith.constant 0 : i32
    return %c0_i32, %c0_i32_0 : i32, i32
  }
  func.func @transform_2(%arg0: i32) -> (i32, i32) {
    %c0_i32 = arith.constant 0 : i32
    %c0_i32_0 = arith.constant 0 : i32
    %c0_i32_1 = arith.constant 0 : i32
    return %c0_i32, %c0_i32_0 : i32, i32
  }
  func.func @transform_3(%arg0: i32) -> (i32, i32) {
    %c0_i32 = arith.constant 0 : i32
    %c0_i32_0 = arith.constant 0 : i32
    return %arg0, %c0_i32 : i32, i32
  }
}

module attributes {stable_mosaic.version = 11 : i64} {
  func.func @_matmul_shift_kernel(%arg0: i32, %arg1: memref<104x72xf32, #tpu.memory_space<vmem>>, %arg2: memref<72x128xf32, #tpu.memory_space<vmem>>, %arg3: memref<1x128xf32, #tpu.memory_space<vmem>>, %arg4: memref<104x128xf32, #tpu.memory_space<vmem>>) attributes {dimension_semantics = [#tpu.dimension_semantics<parallel>], iteration_bounds = array<i64: 1>, scalar_prefetch = 0 : i64, scratch_operands = 0 : i64, tpu.core_type = #tpu.core_type<tc>, window_params = [{transform_indices = @transform_0, window_bounds = array<i64: 104, 72>}, {pipeline_mode = #tpu.pipeline_mode<synchronous>, transform_indices = @transform_1, window_bounds = array<i64: 72, 128>}, {pipeline_mode = #tpu.pipeline_mode<synchronous>, transform_indices = @transform_2, window_bounds = array<i64: 1, 128>}, {transform_indices = @transform_3, window_bounds = array<i64: 104, 128>}]} {
    %c0 = arith.constant 0 : index
    %c0_0 = arith.constant 0 : index
    %0 = vector.load %arg1[%c0, %c0_0] : memref<104x72xf32, #tpu.memory_space<vmem>>, vector<104x72xf32>
    %c0_1 = arith.constant 0 : index
    %c0_2 = arith.constant 0 : index
    %1 = vector.load %arg2[%c0_1, %c0_2] : memref<72x128xf32, #tpu.memory_space<vmem>>, vector<72x128xf32>
    %cst = arith.constant dense<0.000000e+00> : vector<104x128xf32>
    %2 = tpu.matmul %0, %1, %cst {dimension_numbers = #tpu.dot_dimension_numbers<[1], [0], [0], [1], [0, 0, 1, 1], [], []>} : vector<104x72xf32>, vector<72x128xf32>, vector<104x128xf32> -> vector<104x128xf32>
    %c0_3 = arith.constant 0 : index
    %c0_4 = arith.constant 0 : index
    %3 = vector.load %arg3[%c0_3, %c0_4] : memref<1x128xf32, #tpu.memory_space<vmem>>, vector<1x128xf32>
    %4 = vector.broadcast %3 : vector<1x128xf32> to vector<104x128xf32>
    %5 = arith.addf %2, %4 : vector<104x128xf32>
    %cst_5 = arith.constant 0.000000e+00 : f32
    %6 = vector.broadcast %cst_5 : f32 to vector<104x128xf32>
    %7 = arith.maximumf %5, %6 : vector<104x128xf32>
    %c0_6 = arith.constant 0 : index
    %c0_7 = arith.constant 0 : index
    %8 = vector.load %arg4[%c0_6, %c0_7] : memref<104x128xf32, #tpu.memory_space<vmem>>, vector<104x128xf32>
    tpu.vector_store %arg4[%c0_6, %c0_7], %7 {strides = array<i32>} : memref<104x128xf32, #tpu.memory_space<vmem>>, vector<104x128xf32>,
    return
  }
  func.func @transform_0(%arg0: i32) -> (i32, i32) {
    %c0_i32 = arith.constant 0 : i32
    %c0_i32_0 = arith.constant 0 : i32
    return %arg0, %c0_i32 : i32, i32
  }
  func.func @transform_1(%arg0: i32) -> (i32, i32) {
    %c0_i32 = arith.constant 0 : i32
    %c0_i32_0 = arith.constant 0 : i32
    %c0_i32_1 = arith.constant 0 : i32
    return %c0_i32, %c0_i32_0 : i32, i32
  }
  func.func @transform_2(%arg0: i32) -> (i32, i32) {
    %c0_i32 = arith.constant 0 : i32
    %c0_i32_0 = arith.constant 0 : i32
    %c0_i32_1 = arith.constant 0 : i32
    return %c0_i32, %c0_i32_0 : i32, i32
  }
  func.func @transform_3(%arg0: i32) -> (i32, i32) {
    %c0_i32 = arith.constant 0 : i32
    %c0_i32_0 = arith.constant 0 : i32
    return %arg0, %c0_i32 : i32, i32
  }
}

module attributes {stable_mosaic.version = 11 : i64} {
  func.func @_head_kernel(%arg0: memref<2x2x512xf32, #tpu.memory_space<vmem>>, %arg1: memref<512x128xf32, #tpu.memory_space<vmem>>, %arg2: memref<1x128xf32, #tpu.memory_space<vmem>>, %arg3: memref<128x128xf32, #tpu.memory_space<vmem>>, %arg4: memref<1x128xf32, #tpu.memory_space<vmem>>, %arg5: memref<2x128xf32, #tpu.memory_space<vmem>>) attributes {dimension_semantics = [], scalar_prefetch = 0 : i64, scratch_operands = 0 : i64, tpu.core_type = #tpu.core_type<tc>} {
    %c0 = arith.constant 0 : index
    %c0_0 = arith.constant 0 : index
    %c0_1 = arith.constant 0 : index
    %0 = vector.load %arg0[%c0, %c0_0, %c0_1] : memref<2x2x512xf32, #tpu.memory_space<vmem>>, vector<2x2x512xf32>
    %cst = arith.constant dense<0.000000e+00> : vector<2x512xf32>
    %1 = vector.multi_reduction <add>, %0, %cst [1] : vector<2x2x512xf32> to vector<2x512xf32>
    %cst_2 = arith.constant 2.000000e+00 : f32
    %2 = vector.broadcast %cst_2 : f32 to vector<2x512xf32>
    %3 = arith.divf %1, %2 : vector<2x512xf32>
    %c0_3 = arith.constant 0 : index
    %c0_4 = arith.constant 0 : index
    %4 = vector.load %arg1[%c0_3, %c0_4] : memref<512x128xf32, #tpu.memory_space<vmem>>, vector<512x128xf32>
    %cst_5 = arith.constant dense<0.000000e+00> : vector<2x128xf32>
    %5 = tpu.matmul %3, %4, %cst_5 {dimension_numbers = #tpu.dot_dimension_numbers<[1], [0], [0], [1], [0, 0, 1, 1], [], []>} : vector<2x512xf32>, vector<512x128xf32>, vector<2x128xf32> -> vector<2x128xf32>
    %c0_6 = arith.constant 0 : index
    %c0_7 = arith.constant 0 : index
    %6 = vector.load %arg2[%c0_6, %c0_7] : memref<1x128xf32, #tpu.memory_space<vmem>>, vector<1x128xf32>
    %7 = vector.broadcast %6 : vector<1x128xf32> to vector<2x128xf32>
    %8 = arith.addf %5, %7 : vector<2x128xf32>
    %c0_8 = arith.constant 0 : index
    %c0_9 = arith.constant 0 : index
    %9 = vector.load %arg3[%c0_8, %c0_9] : memref<128x128xf32, #tpu.memory_space<vmem>>, vector<128x128xf32>
    %cst_10 = arith.constant dense<0.000000e+00> : vector<2x128xf32>
    %10 = tpu.matmul %8, %9, %cst_10 {dimension_numbers = #tpu.dot_dimension_numbers<[1], [0], [0], [1], [0, 0, 1, 1], [], []>} : vector<2x128xf32>, vector<128x128xf32>, vector<2x128xf32> -> vector<2x128xf32>
    %c0_11 = arith.constant 0 : index
    %c0_12 = arith.constant 0 : index
    %11 = vector.load %arg4[%c0_11, %c0_12] : memref<1x128xf32, #tpu.memory_space<vmem>>, vector<1x128xf32>
    %12 = vector.broadcast %11 : vector<1x128xf32> to vector<2x128xf32>
    %13 = arith.addf %10, %12 : vector<2x128xf32>
    %c0_13 = arith.constant 0 : index
    %c0_14 = arith.constant 0 : index
    %14 = vector.load %arg5[%c0_13, %c0_14] : memref<2x128xf32, #tpu.memory_space<vmem>>, vector<2x128xf32>
    tpu.vector_store %arg5[%c0_13, %c0_14], %13 {strides = array<i32>} : memref<2x128xf32, #tpu.memory_space<vmem>>, vector<2x128xf32>,
    return
  }
}

</mosaic_0001>

<bundles_post_ra>
// kernel: v2convnet_forward.3
= control target key start
LH: loop header
LB: loop body
LE: loop exit
PB: predicated region body
PF: predicated region fallthrough
CT: control target
= control target key end

     0   :  { %vm220_vm0 = vcmask 1043456   ;;  %vm72_vm1 = vcmask 293888   ;;  %s939_s1 = inlined_call_operand.vmem [shape: f32[36,128], index: 1, kind: input, shape index: {}]   ;;  %s940_s0 = inlined_call_operand.vmem [shape: f32[392,36], index: 0, kind: input, shape index: {}]   ;;  %s941_s2 = inlined_call_operand.vmem [shape: f32[1,128], index: 2, kind: input, shape index: {}]   ;;  %s942_s3 = inlined_call_operand.vmem [shape: f32[392,128], index: 3, kind: output, shape index: {}]  }
   0x1   :  { %v67_v0 = vld [vmem:[%s939_s1 + $0x20] sm:$0xf]  ;;  %v66_v1 = vld [vmem:[%s939_s1 + $0x18] sm:$0xff]  ;;  %v65_v2 = vld [vmem:[%s939_s1 + $0x10] sm:$0xff] }
   0x2   :  { %492 = vmatpush.msk.msra.mxu2 %vm220_vm0, %v67_v0  ;;  %493 = vmatpush.msk.msra.mxu3 %vm220_vm0, %v67_v0  ;;  %v64_v3 = vld [vmem:[%s939_s1 + $0x8] sm:$0xff]  ;;  %v63_v4 = vld [vmem:[%s939_s1] sm:$0xff]  ;;  %v52_v10 = vld [vmem:[%s940_s0 + $0x130] sm:$0xff] }
   0x3   :  { %441 = vmatpush.msk.msra.mxu0 %vm220_vm0, %v67_v0  ;;  %491 = vmatpush.msk.msra.mxu1 %vm220_vm0, %v67_v0  ;;  %v38_v5 = vld [vmem:[%s940_s0 + $0xc0] sm:$0xff]  ;;  %v51_v6 = vld [vmem:[%s940_s0 + $0x128] sm:$0xff]  ;;  %v40_v13 = vld [vmem:[%s940_s0 + $0xd0] sm:$0xff] }
   0x4   :  { %495 = vmatpush.msra.mxu2 %v66_v1  ;;  %496 = vmatpush.msra.mxu3 %v66_v1  ;;  %v14_v7 = vld [vmem:[%s940_s0] sm:$0xff]  ;;  %v39_v9 = vld [vmem:[%s940_s0 + $0xc8] sm:$0xff]  ;;  %v53_v14 = vld [vmem:[%s940_s0 + $0x138] sm:$0xff] }
   0x5   :  { %236 = vmatpush.msra.mxu0 %v66_v1  ;;  %494 = vmatpush.msra.mxu1 %v66_v1  ;;  %v26_v8 = vld [vmem:[%s940_s0 + $0x60] sm:$0xff]  ;;  %v15_v11 = vld [vmem:[%s940_s0 + $0x8] sm:$0xff]  ;;  %v16_v15 = vld [vmem:[%s940_s0 + $0x10] sm:$0xff] }
   0x6   :  { %498 = vmatpush.msra.mxu2 %v65_v2  ;;  %499 = vmatpush.msra.mxu3 %v65_v2  ;;  %v27_v12 = vld [vmem:[%s940_s0 + $0x68] sm:$0xff]  ;;  %v28_v16 = vld [vmem:[%s940_s0 + $0x70] sm:$0xff]  ;;  %v41_v17 = vld [vmem:[%s940_s0 + $0xd8] sm:$0xff] }
   0x7   :  { %237 = vmatpush.msra.mxu0 %v65_v2  ;;  %497 = vmatpush.msra.mxu1 %v65_v2  ;;  %v54_v18 = vld [vmem:[%s940_s0 + $0x140] sm:$0xff]  ;;  %v17_v19 = vld [vmem:[%s940_s0 + $0x18] sm:$0xff]  ;;  %v55_v22 = vld [vmem:[%s940_s0 + $0x148] sm:$0xff] }
   0x8   :  { %501 = vmatpush.msra.mxu2 %v64_v3  ;;  %502 = vmatpush.msra.mxu3 %v64_v3  ;;  %v29_v20 = vld [vmem:[%s940_s0 + $0x78] sm:$0xff]  ;;  %v42_v21 = vld [vmem:[%s940_s0 + $0xe0] sm:$0xff]  ;;  %v43_v25 = vld [vmem:[%s940_s0 + $0xe8] sm:$0xff] }
   0x9   :  { %238 = vmatpush.msra.mxu0 %v64_v3  ;;  %500 = vmatpush.msra.mxu1 %v64_v3  ;;  %v18_v23 = vld [vmem:[%s940_s0 + $0x20] sm:$0xff]  ;;  %v56_v26 = vld [vmem:[%s940_s0 + $0x150] sm:$0xff]  ;;  %v19_v27 = vld [vmem:[%s940_s0 + $0x28] sm:$0xff] }
   0xa   :  { %504 = vmatpush.msra.mxu2 %v63_v4  ;;  %505 = vmatpush.msra.mxu3 %v63_v4  ;;  %v30_v24 = vld [vmem:[%s940_s0 + $0x80] sm:$0xff]  ;;  %v31_v28 = vld [vmem:[%s940_s0 + $0x88] sm:$0xff]  ;;  %v44_v29 = vld [vmem:[%s940_s0 + $0xf0] sm:$0xff] }
   0xb   :  { %466 = vmatmul.msk.f32.vlgmr.msra.gmra.mxu2 %vm72_vm1, %v38_v5  ;;  %479 = vmatmul.msk.f32.vlgmr.msra.gmra.mxu3 %vm72_vm1, %v51_v6  ;;  %v57_v30 = vld [vmem:[%s940_s0 + $0x158] sm:$0xff]  ;;  %v20_v31 = vld [vmem:[%s940_s0 + $0x30] sm:$0xff]  ;;  %v58_v34 = vld [vmem:[%s940_s0 + $0x160] sm:$0xff] }
   0xc   :  { %239 = vmatpush.msra.mxu0 %v63_v4  ;;  %503 = vmatpush.msra.mxu1 %v63_v4  ;;  %v32_v32 = vld [vmem:[%s940_s0 + $0x90] sm:$0xff]  ;;  %v45_v33 = vld [vmem:[%s940_s0 + $0xf8] sm:$0xff]  ;;  %v46_v37 = vld [vmem:[%s940_s0 + $0x100] sm:$0xff] }
   0xd   :  { %442 = vmatmul.msk.f32.vlgmr.msra.gmra.mxu0 %vm72_vm1, %v14_v7  ;;  %454 = vmatmul.msk.f32.vlgmr.msra.gmra.mxu1 %vm72_vm1, %v26_v8  ;;  %v21_v35 = vld [vmem:[%s940_s0 + $0x38] sm:$0xff]  ;;  %v59_v38 = vld [vmem:[%s940_s0 + $0x168] sm:$0xff]  ;;  %v22_v39 = vld [vmem:[%s940_s0 + $0x40] sm:$0xff] }
   0xe   :  { %v33_v36 = vld [vmem:[%s940_s0 + $0x98] sm:$0xff]  ;;  %v34_v40 = vld [vmem:[%s940_s0 + $0xa0] sm:$0xff]  ;;  %v47_v41 = vld [vmem:[%s940_s0 + $0x108] sm:$0xff] }
   0xf   :  { %v60_v42 = vld [vmem:[%s940_s0 + $0x170] sm:$0xff]  ;;  %v23_v43 = vld [vmem:[%s940_s0 + $0x48] sm:$0xff]  ;;  %v61_v46 = vld [vmem:[%s940_s0 + $0x178] sm:$0xff] }
  0x10   :  { %v35_v44 = vld [vmem:[%s940_s0 + $0xa8] sm:$0xff]  ;;  %v48_v45 = vld [vmem:[%s940_s0 + $0x110] sm:$0xff]  ;;  %v49_v49 = vld [vmem:[%s940_s0 + $0x118] sm:$0xff] }
  0x11   :  { %v24_v47 = vld [vmem:[%s940_s0 + $0x50] sm:$0xff]  ;;  %v62_v50 = vld [vmem:[%s940_s0 + $0x180] sm:$0xff]  ;;  %v25_v51 = vld [vmem:[%s940_s0 + $0x58] sm:$0xff] }
  0x12   :  { %v36_v48 = vld [vmem:[%s940_s0 + $0xb0] sm:$0xff]  ;;  %v37_v52 = vld [vmem:[%s940_s0 + $0xb8] sm:$0xff]  ;;  %v50_v53 = vld [vmem:[%s940_s0 + $0x120] sm:$0xff] }
  0x13   :  { %467 = vmatmul.msk.f32.gmra.mxu2 %vm72_vm1, %v39_v9  ;;  %480 = vmatmul.msk.f32.gmra.mxu3 %vm72_vm1, %v52_v10  ;;  %v741_v54 = vld [vmem:[%s941_s2] ss:$0 sm:$0xff] }
  0x15   :  { %443 = vmatmul.msk.f32.gmra.mxu0 %vm72_vm1, %v15_v11  ;;  %455 = vmatmul.msk.f32.gmra.mxu1 %vm72_vm1, %v27_v12 }
  0x1b   :  { %468 = vmatmul.msk.f32.gmra.mxu2 %vm72_vm1, %v40_v13  ;;  %481 = vmatmul.msk.f32.gmra.mxu3 %vm72_vm1, %v53_v14 }
  0x1d   :  { %444 = vmatmul.msk.f32.gmra.mxu0 %vm72_vm1, %v16_v15  ;;  %456 = vmatmul.msk.f32.gmra.mxu1 %vm72_vm1, %v28_v16 }
  0x23   :  { %469 = vmatmul.msk.f32.gmra.mxu2 %vm72_vm1, %v41_v17  ;;  %482 = vmatmul.msk.f32.gmra.mxu3 %vm72_vm1, %v54_v18 }
  0x25   :  { %445 = vmatmul.msk.f32.gmra.mxu0 %vm72_vm1, %v17_v19  ;;  %457 = vmatmul.msk.f32.gmra.mxu1 %vm72_vm1, %v29_v20 }
  0x2b   :  { %470 = vmatmul.msk.f32.gmra.mxu2 %vm72_vm1, %v42_v21  ;;  %483 = vmatmul.msk.f32.gmra.mxu3 %vm72_vm1, %v55_v22 }
  0x2d   :  { %446 = vmatmul.msk.f32.gmra.mxu0 %vm72_vm1, %v18_v23  ;;  %458 = vmatmul.msk.f32.gmra.mxu1 %vm72_vm1, %v30_v24 }
  0x33   :  { %471 = vmatmul.msk.f32.gmra.mxu2 %vm72_vm1, %v43_v25  ;;  %484 = vmatmul.msk.f32.gmra.mxu3 %vm72_vm1, %v56_v26 }
  0x35   :  { %447 = vmatmul.msk.f32.gmra.mxu0 %vm72_vm1, %v19_v27  ;;  %459 = vmatmul.msk.f32.gmra.mxu1 %vm72_vm1, %v31_v28 }
  0x3b   :  { %472 = vmatmul.msk.f32.gmra.mxu2 %vm72_vm1, %v44_v29  ;;  %485 = vmatmul.msk.f32.gmra.mxu3 %vm72_vm1, %v57_v30 }
  0x3d   :  { %448 = vmatmul.msk.f32.gmra.mxu0 %vm72_vm1, %v20_v31  ;;  %460 = vmatmul.msk.f32.gmra.mxu1 %vm72_vm1, %v32_v32 }
  0x43   :  { %473 = vmatmul.msk.f32.gmra.mxu2 %vm72_vm1, %v45_v33  ;;  %486 = vmatmul.msk.f32.gmra.mxu3 %vm72_vm1, %v58_v34 }
  0x45   :  { %449 = vmatmul.msk.f32.gmra.mxu0 %vm72_vm1, %v21_v35  ;;  %461 = vmatmul.msk.f32.gmra.mxu1 %vm72_vm1, %v33_v36 }
  0x4b   :  { %474 = vmatmul.msk.f32.gmra.mxu2 %vm72_vm1, %v46_v37  ;;  %487 = vmatmul.msk.f32.gmra.mxu3 %vm72_vm1, %v59_v38 }
  0x4d   :  { %450 = vmatmul.msk.f32.gmra.mxu0 %vm72_vm1, %v22_v39  ;;  %462 = vmatmul.msk.f32.gmra.mxu1 %vm72_vm1, %v34_v40 }
  0x53   :  { %475 = vmatmul.msk.f32.gmra.mxu2 %vm72_vm1, %v47_v41  ;;  %488 = vmatmul.msk.f32.gmra.mxu3 %vm72_vm1, %v60_v42 }
  0x55   :  { %451 = vmatmul.msk.f32.gmra.mxu0 %vm72_vm1, %v23_v43  ;;  %463 = vmatmul.msk.f32.gmra.mxu1 %vm72_vm1, %v35_v44 }
  0x5b   :  { %476 = vmatmul.msk.f32.gmra.mxu2 %vm72_vm1, %v48_v45  ;;  %489 = vmatmul.msk.f32.gmra.mxu3 %vm72_vm1, %v61_v46 }
  0x5d   :  { %452 = vmatmul.msk.f32.gmra.mxu0 %vm72_vm1, %v24_v47  ;;  %464 = vmatmul.msk.f32.gmra.mxu1 %vm72_vm1, %v36_v48 }
  0x63   :  { %477 = vmatmul.msk.f32.gmra.mxu2 %vm72_vm1, %v49_v49  ;;  %490 = vmatmul.msk.f32.gmra.mxu3 %vm72_vm1, %v62_v50 }
  0x65   :  { %453 = vmatmul.msk.f32.gmra.mxu0 %vm72_vm1, %v25_v51  ;;  %465 = vmatmul.msk.f32.gmra.mxu1 %vm72_vm1, %v37_v52 }
  0x6b   :  { %478 = vmatmul.msk.f32.gmra.mxu2 %vm72_vm1, %v50_v53 }
  0x8a   :  { %v241_v55 = vpop.f32.mrf.mxu0  ;;  %v277_v56 = vpop.f32.mrf.mxu1 }
  0x8b   :  { %v242_v57 = vadd.f32 %v741_v54, %v241_v55  ;;  %v278_v58 = vadd.f32 %v741_v54, %v277_v56 }
  0x8d   :  { %388 = vst [vmem:[%s942_s3] sm:$0xff] %v242_v57 }
  0x8e   :  { %v313_v59 = vpop.f32.mrf.mxu2  ;;  %400 = vst [vmem:[%s942_s3 + $0x60] sm:$0xff] %v278_v58  ;;  %v352_v60 = vpop.f32.mrf.mxu3 }
  0x8f   :  { %v314_v61 = vadd.f32 %v741_v54, %v313_v59  ;;  %v353_v62 = vadd.f32 %v741_v54, %v352_v60 }
  0x91   :  { %412 = vst [vmem:[%s942_s3 + $0xc0] sm:$0xff] %v314_v61 }
  0x92   :  { %425 = vst [vmem:[%s942_s3 + $0x128] sm:$0xff] %v353_v62  ;;  %v244_v63 = vpop.f32.mrf.mxu0  ;;  %v280_v0 = vpop.f32.mrf.mxu1 }
  0x93   :  { %v245_v1 = vadd.f32 %v741_v54, %v244_v63  ;;  %v281_v2 = vadd.f32 %v741_v54, %v280_v0 }
  0x95   :  { %389 = vst [vmem:[%s942_s3 + $0x8] sm:$0xff] %v245_v1 }
  0x96   :  { %v316_v3 = vpop.f32.mrf.mxu2  ;;  %401 = vst [vmem:[%s942_s3 + $0x68] sm:$0xff] %v281_v2  ;;  %v355_v4 = vpop.f32.mrf.mxu3 }
  0x97   :  { %v317_v5 = vadd.f32 %v741_v54, %v316_v3  ;;  %v356_v6 = vadd.f32 %v741_v54, %v355_v4 }
  0x99   :  { %413 = vst [vmem:[%s942_s3 + $0xc8] sm:$0xff] %v317_v5 }
  0x9a   :  { %426 = vst [vmem:[%s942_s3 + $0x130] sm:$0xff] %v356_v6  ;;  %v247_v7 = vpop.f32.mrf.mxu0  ;;  %v283_v8 = vpop.f32.mrf.mxu1 }
  0x9b   :  { %v248_v9 = vadd.f32 %v741_v54, %v247_v7  ;;  %v284_v10 = vadd.f32 %v741_v54, %v283_v8 }
  0x9d   :  { %390 = vst [vmem:[%s942_s3 + $0x10] sm:$0xff] %v248_v9 }
  0x9e   :  { %v319_v11 = vpop.f32.mrf.mxu2  ;;  %402 = vst [vmem:[%s942_s3 + $0x70] sm:$0xff] %v284_v10  ;;  %v358_v12 = vpop.f32.mrf.mxu3 }
  0x9f   :  { %v320_v13 = vadd.f32 %v741_v54, %v319_v11  ;;  %v359_v14 = vadd.f32 %v741_v54, %v358_v12 }
  0xa1   :  { %414 = vst [vmem:[%s942_s3 + $0xd0] sm:$0xff] %v320_v13 }
  0xa2   :  { %427 = vst [vmem:[%s942_s3 + $0x138] sm:$0xff] %v359_v14  ;;  %v250_v15 = vpop.f32.mrf.mxu0  ;;  %v286_v16 = vpop.f32.mrf.mxu1 }
  0xa3   :  { %v251_v17 = vadd.f32 %v741_v54, %v250_v15  ;;  %v287_v18 = vadd.f32 %v741_v54, %v286_v16 }
  0xa5   :  { %391 = vst [vmem:[%s942_s3 + $0x18] sm:$0xff] %v251_v17 }
  0xa6   :  { %v322_v19 = vpop.f32.mrf.mxu2  ;;  %403 = vst [vmem:[%s942_s3 + $0x78] sm:$0xff] %v287_v18  ;;  %v361_v20 = vpop.f32.mrf.mxu3 }
  0xa7   :  { %v323_v21 = vadd.f32 %v741_v54, %v322_v19  ;;  %v362_v22 = vadd.f32 %v741_v54, %v361_v20 }
  0xa9   :  { %415 = vst [vmem:[%s942_s3 + $0xd8] sm:$0xff] %v323_v21 }
  0xaa   :  { %428 = vst [vmem:[%s942_s3 + $0x140] sm:$0xff] %v362_v22  ;;  %v253_v23 = vpop.f32.mrf.mxu0  ;;  %v289_v24 = vpop.f32.mrf.mxu1 }
  0xab   :  { %v254_v25 = vadd.f32 %v741_v54, %v253_v23  ;;  %v290_v26 = vadd.f32 %v741_v54, %v289_v24 }
  0xad   :  { %392 = vst [vmem:[%s942_s3 + $0x20] sm:$0xff] %v254_v25 }
  0xae   :  { %v325_v27 = vpop.f32.mrf.mxu2  ;;  %404 = vst [vmem:[%s942_s3 + $0x80] sm:$0xff] %v290_v26  ;;  %v364_v28 = vpop.f32.mrf.mxu3 }
  0xaf   :  { %v326_v29 = vadd.f32 %v741_v54, %v325_v27  ;;  %v365_v30 = vadd.f32 %v741_v54, %v364_v28 }
  0xb1   :  { %416 = vst [vmem:[%s942_s3 + $0xe0] sm:$0xff] %v326_v29 }
  0xb2   :  { %429 = vst [vmem:[%s942_s3 + $0x148] sm:$0xff] %v365_v30  ;;  %v256_v31 = vpop.f32.mrf.mxu0  ;;  %v292_v32 = vpop.f32.mrf.mxu1 }
  0xb3   :  { %v257_v33 = vadd.f32 %v741_v54, %v256_v31  ;;  %v293_v34 = vadd.f32 %v741_v54, %v292_v32 }
  0xb5   :  { %393 = vst [vmem:[%s942_s3 + $0x28] sm:$0xff] %v257_v33 }
  0xb6   :  { %v328_v35 = vpop.f32.mrf.mxu2  ;;  %405 = vst [vmem:[%s942_s3 + $0x88] sm:$0xff] %v293_v34  ;;  %v367_v36 = vpop.f32.mrf.mxu3 }
  0xb7   :  { %v329_v37 = vadd.f32 %v741_v54, %v328_v35  ;;  %v368_v38 = vadd.f32 %v741_v54, %v367_v36 }
  0xb9   :  { %417 = vst [vmem:[%s942_s3 + $0xe8] sm:$0xff] %v329_v37 }
  0xba   :  { %430 = vst [vmem:[%s942_s3 + $0x150] sm:$0xff] %v368_v38  ;;  %v259_v39 = vpop.f32.mrf.mxu0  ;;  %v295_v40 = vpop.f32.mrf.mxu1 }
  0xbb   :  { %v260_v41 = vadd.f32 %v741_v54, %v259_v39  ;;  %v296_v42 = vadd.f32 %v741_v54, %v295_v40 }
  0xbd   :  { %394 = vst [vmem:[%s942_s3 + $0x30] sm:$0xff] %v260_v41 }
  0xbe   :  { %v331_v43 = vpop.f32.mrf.mxu2  ;;  %406 = vst [vmem:[%s942_s3 + $0x90] sm:$0xff] %v296_v42  ;;  %v370_v44 = vpop.f32.mrf.mxu3 }
  0xbf   :  { %v332_v45 = vadd.f32 %v741_v54, %v331_v43  ;;  %v371_v46 = vadd.f32 %v741_v54, %v370_v44 }
  0xc1   :  { %418 = vst [vmem:[%s942_s3 + $0xf0] sm:$0xff] %v332_v45 }
  0xc2   :  { %431 = vst [vmem:[%s942_s3 + $0x158] sm:$0xff] %v371_v46  ;;  %v262_v47 = vpop.f32.mrf.mxu0  ;;  %v298_v48 = vpop.f32.mrf.mxu1 }
  0xc3   :  { %v263_v49 = vadd.f32 %v741_v54, %v262_v47  ;;  %v299_v50 = vadd.f32 %v741_v54, %v298_v48 }
  0xc5   :  { %395 = vst [vmem:[%s942_s3 + $0x38] sm:$0xff] %v263_v49 }
  0xc6   :  { %v334_v51 = vpop.f32.mrf.mxu2  ;;  %407 = vst [vmem:[%s942_s3 + $0x98] sm:$0xff] %v299_v50  ;;  %v373_v52 = vpop.f32.mrf.mxu3 }
  0xc7   :  { %v335_v53 = vadd.f32 %v741_v54, %v334_v51  ;;  %v374_v55 = vadd.f32 %v741_v54, %v373_v52 }
  0xc9   :  { %419 = vst [vmem:[%s942_s3 + $0xf8] sm:$0xff] %v335_v53 }
  0xca   :  { %432 = vst [vmem:[%s942_s3 + $0x160] sm:$0xff] %v374_v55  ;;  %v265_v56 = vpop.f32.mrf.mxu0  ;;  %v301_v57 = vpop.f32.mrf.mxu1 }
  0xcb   :  { %v266_v58 = vadd.f32 %v741_v54, %v265_v56  ;;  %v302_v59 = vadd.f32 %v741_v54, %v301_v57 }
  0xcd   :  { %396 = vst [vmem:[%s942_s3 + $0x40] sm:$0xff] %v266_v58 }
  0xce   :  { %v337_v60 = vpop.f32.mrf.mxu2  ;;  %408 = vst [vmem:[%s942_s3 + $0xa0] sm:$0xff] %v302_v59  ;;  %v376_v61 = vpop.f32.mrf.mxu3 }
  0xcf   :  { %v338_v62 = vadd.f32 %v741_v54, %v337_v60  ;;  %v377_v63 = vadd.f32 %v741_v54, %v376_v61 }
  0xd1   :  { %420 = vst [vmem:[%s942_s3 + $0x100] sm:$0xff] %v338_v62 }
  0xd2   :  { %433 = vst [vmem:[%s942_s3 + $0x168] sm:$0xff] %v377_v63  ;;  %v268_v0 = vpop.f32.mrf.mxu0  ;;  %v304_v1 = vpop.f32.mrf.mxu1 }
  0xd3   :  { %v269_v2 = vadd.f32 %v741_v54, %v268_v0  ;;  %v305_v3 = vadd.f32 %v741_v54, %v304_v1 }
  0xd5   :  { %397 = vst [vmem:[%s942_s3 + $0x48] sm:$0xff] %v269_v2 }
  0xd6   :  { %v340_v4 = vpop.f32.mrf.mxu2  ;;  %409 = vst [vmem:[%s942_s3 + $0xa8] sm:$0xff] %v305_v3  ;;  %v379_v5 = vpop.f32.mrf.mxu3 }
  0xd7   :  { %v341_v6 = vadd.f32 %v741_v54, %v340_v4  ;;  %v380_v7 = vadd.f32 %v741_v54, %v379_v5 }
  0xd9   :  { %421 = vst [vmem:[%s942_s3 + $0x108] sm:$0xff] %v341_v6 }
  0xda   :  { %434 = vst [vmem:[%s942_s3 + $0x170] sm:$0xff] %v380_v7  ;;  %v271_v8 = vpop.f32.mrf.mxu0  ;;  %v307_v9 = vpop.f32.mrf.mxu1 }
  0xdb   :  { %v272_v10 = vadd.f32 %v741_v54, %v271_v8  ;;  %v308_v11 = vadd.f32 %v741_v54, %v307_v9 }
  0xdd   :  { %398 = vst [vmem:[%s942_s3 + $0x50] sm:$0xff] %v272_v10 }
  0xde   :  { %v343_v12 = vpop.f32.mrf.mxu2  ;;  %410 = vst [vmem:[%s942_s3 + $0xb0] sm:$0xff] %v308_v11  ;;  %v382_v13 = vpop.f32.mrf.mxu3 }
  0xdf   :  { %v344_v14 = vadd.f32 %v741_v54, %v343_v12  ;;  %v383_v15 = vadd.f32 %v741_v54, %v382_v13 }
  0xe1   :  { %422 = vst [vmem:[%s942_s3 + $0x110] sm:$0xff] %v344_v14 }
  0xe2   :  { %435 = vst [vmem:[%s942_s3 + $0x178] sm:$0xff] %v383_v15  ;;  %v274_v16 = vpop.f32.mrf.mxu0  ;;  %v310_v17 = vpop.f32.mrf.mxu1 }
  0xe3   :  { %v275_v18 = vadd.f32 %v741_v54, %v274_v16  ;;  %v311_v19 = vadd.f32 %v741_v54, %v310_v17 }
  0xe5   :  { %399 = vst [vmem:[%s942_s3 + $0x58] sm:$0xff] %v275_v18 }
  0xe6   :  { %v346_v20 = vpop.f32.mrf.mxu2  ;;  %411 = vst [vmem:[%s942_s3 + $0xb8] sm:$0xff] %v311_v19  ;;  %v385_v21 = vpop.f32.mrf.mxu3 }
  0xe7   :  { %v347_v22 = vadd.f32 %v741_v54, %v346_v20  ;;  %v386_v23 = vadd.f32 %v741_v54, %v385_v21 }
  0xe9   :  { %423 = vst [vmem:[%s942_s3 + $0x118] sm:$0xff] %v347_v22 }
  0xea   :  { %436 = vst [vmem:[%s942_s3 + $0x180] sm:$0xff] %v386_v23 }
  0xee   :  { %v349_v24 = vpop.f32.mrf.mxu2 }
  0xef   :  { %v350_v25 = vadd.f32 %v741_v54, %v349_v24 }
  0xf1   :  { %424 = vst [vmem:[%s942_s3 + $0x120] sm:$0xff] %v350_v25 }

// kernel: v2convnet_forward.4
= control target key start
LH: loop header
LB: loop body
LE: loop exit
PB: predicated region body
PF: predicated region fallthrough
CT: control target
= control target key end

     0   :  { %vm40_vm0 = vcmask 588800   ;;  %s348_s1 = inlined_call_operand.vmem [shape: f32[72,128], index: 1, kind: input, shape index: {}]   ;;  %s349_s2 = inlined_call_operand.vmem [shape: f32[1,128], index: 2, kind: input, shape index: {}]   ;;  %s350_s0 = inlined_call_operand.vmem [shape: f32[104,72], index: 0, kind: input, shape index: {}]   ;;  %s351_s3 = inlined_call_operand.vmem [shape: f32[104,128], index: 3, kind: output, shape index: {}]  }
   0x1   :  { %v35_v0 = vld [vmem:[%s348_s1 + $0x40] sm:$0xff]  ;;  %v34_v1 = vld [vmem:[%s348_s1 + $0x38] sm:$0xff]  ;;  %v33_v2 = vld [vmem:[%s348_s1 + $0x30] sm:$0xff] }
   0x2   :  { %180 = vmatpush.msra.mxu2 %v35_v0  ;;  %181 = vmatpush.msra.mxu3 %v35_v0  ;;  %v32_v3 = vld [vmem:[%s348_s1 + $0x28] sm:$0xff]  ;;  %v31_v4 = vld [vmem:[%s348_s1 + $0x20] sm:$0xff]  ;;  %v30_v5 = vld [vmem:[%s348_s1 + $0x18] sm:$0xff] }
   0x3   :  { %87 = vmatpush.msra.mxu0 %v35_v0  ;;  %179 = vmatpush.msra.mxu1 %v35_v0  ;;  %v29_v6 = vld [vmem:[%s348_s1 + $0x10] sm:$0xff]  ;;  %v28_v7 = vld [vmem:[%s348_s1 + $0x8] sm:$0xff]  ;;  %v27_v8 = vld [vmem:[%s348_s1] sm:$0xff] }
   0x4   :  { %183 = vmatpush.msra.mxu2 %v34_v1  ;;  %184 = vmatpush.msra.mxu3 %v34_v1  ;;  %v20_v9 = vld [vmem:[%s350_s0 + $0x30] sm:$0xff]  ;;  %v14_v11 = vld [vmem:[%s350_s0] sm:$0xff]  ;;  %v17_v12 = vld [vmem:[%s350_s0 + $0x18] sm:$0xff] }
   0x5   :  { %88 = vmatpush.msra.mxu0 %v34_v1  ;;  %182 = vmatpush.msra.mxu1 %v34_v1  ;;  %v24_v10 = vld [vmem:[%s350_s0 + $0x50] sm:$0xff]  ;;  %v21_v13 = vld [vmem:[%s350_s0 + $0x38] sm:$0xff]  ;;  %v15_v15 = vld [vmem:[%s350_s0 + $0x8] sm:$0xff] }
   0x6   :  { %186 = vmatpush.msra.mxu2 %v33_v2  ;;  %187 = vmatpush.msra.mxu3 %v33_v2  ;;  %v25_v14 = vld [vmem:[%s350_s0 + $0x58] sm:$0xff]  ;;  %v18_v16 = vld [vmem:[%s350_s0 + $0x20] sm:$0xff]  ;;  %v16_v19 = vld [vmem:[%s350_s0 + $0x10] sm:$0xff] }
   0x7   :  { %89 = vmatpush.msra.mxu0 %v33_v2  ;;  %185 = vmatpush.msra.mxu1 %v33_v2  ;;  %v22_v17 = vld [vmem:[%s350_s0 + $0x40] sm:$0xff]  ;;  %v19_v20 = vld [vmem:[%s350_s0 + $0x28] sm:$0xff] }
   0x8   :  { %189 = vmatpush.msra.mxu2 %v32_v3  ;;  %190 = vmatpush.msra.mxu3 %v32_v3  ;;  %v26_v18 = vld [vmem:[%s350_s0 + $0x60] sm:$0xff]  ;;  %v23_v21 = vld [vmem:[%s350_s0 + $0x48] sm:$0xff] }
   0x9   :  { %90 = vmatpush.msra.mxu0 %v32_v3  ;;  %188 = vmatpush.msra.mxu1 %v32_v3  ;;  %v206_v22 = vld [vmem:[%s349_s2] ss:$0 sm:$0xff] }
   0xa   :  { %192 = vmatpush.msra.mxu2 %v31_v4  ;;  %193 = vmatpush.msra.mxu3 %v31_v4 }
   0xb   :  { %91 = vmatpush.msra.mxu0 %v31_v4  ;;  %191 = vmatpush.msra.mxu1 %v31_v4 }
   0xc   :  { %195 = vmatpush.msra.mxu2 %v30_v5  ;;  %196 = vmatpush.msra.mxu3 %v30_v5 }
   0xd   :  { %92 = vmatpush.msra.mxu0 %v30_v5  ;;  %194 = vmatpush.msra.mxu1 %v30_v5 }
   0xe   :  { %198 = vmatpush.msra.mxu2 %v29_v6  ;;  %199 = vmatpush.msra.mxu3 %v29_v6 }
   0xf   :  { %93 = vmatpush.msra.mxu0 %v29_v6  ;;  %197 = vmatpush.msra.mxu1 %v29_v6 }
  0x10   :  { %201 = vmatpush.msra.mxu2 %v28_v7  ;;  %202 = vmatpush.msra.mxu3 %v28_v7 }
  0x11   :  { %94 = vmatpush.msra.mxu0 %v28_v7  ;;  %200 = vmatpush.msra.mxu1 %v28_v7 }
  0x12   :  { %204 = vmatpush.msra.mxu2 %v27_v8  ;;  %205 = vmatpush.msra.mxu3 %v27_v8 }
  0x13   :  { %172 = vmatmul.msk.f32.vlgmr.msra.gmra.mxu2 %vm40_vm0, %v20_v9  ;;  %176 = vmatmul.msk.f32.vlgmr.msra.gmra.mxu3 %vm40_vm0, %v24_v10 }
  0x14   :  { %95 = vmatpush.msra.mxu0 %v27_v8  ;;  %203 = vmatpush.msra.mxu1 %v27_v8 }
  0x15   :  { %166 = vmatmul.msk.f32.vlgmr.msra.gmra.mxu0 %vm40_vm0, %v14_v11  ;;  %169 = vmatmul.msk.f32.vlgmr.msra.gmra.mxu1 %vm40_vm0, %v17_v12 }
  0x1b   :  { %173 = vmatmul.msk.f32.gmra.mxu2 %vm40_vm0, %v21_v13  ;;  %177 = vmatmul.msk.f32.gmra.mxu3 %vm40_vm0, %v25_v14 }
  0x1d   :  { %167 = vmatmul.msk.f32.gmra.mxu0 %vm40_vm0, %v15_v15  ;;  %170 = vmatmul.msk.f32.gmra.mxu1 %vm40_vm0, %v18_v16 }
  0x23   :  { %174 = vmatmul.msk.f32.gmra.mxu2 %vm40_vm0, %v22_v17  ;;  %178 = vmatmul.msk.f32.gmra.mxu3 %vm40_vm0, %v26_v18 }
  0x25   :  { %168 = vmatmul.msk.f32.gmra.mxu0 %vm40_vm0, %v16_v19  ;;  %171 = vmatmul.msk.f32.gmra.mxu1 %vm40_vm0, %v19_v20 }
  0x2b   :  { %175 = vmatmul.msk.f32.gmra.mxu2 %vm40_vm0, %v23_v21 }
  0x92   :  { %v97_v23 = vpop.f32.mrf.mxu0  ;;  %v106_v24 = vpop.f32.mrf.mxu1 }
  0x93   :  { %v98_v25 = vadd.f32 %v206_v22, %v97_v23  ;;  %v107_v26 = vadd.f32 %v206_v22, %v106_v24 }
  0x95   :  { %v136_v27 = vmax.f32 %v98_v25, 0.0  ;;  %v139_v28 = vmax.f32 %v107_v26, 0.0 }
  0x96   :  { %v115_v29 = vpop.f32.mrf.mxu2  ;;  %v127_v30 = vpop.f32.mrf.mxu3 }
  0x97   :  { %v116_v31 = vadd.f32 %v206_v22, %v115_v29  ;;  %149 = vst [vmem:[%s351_s3] sm:$0xff] %v136_v27  ;;  %v128_v32 = vadd.f32 %v206_v22, %v127_v30 }
  0x98   :  { %152 = vst [vmem:[%s351_s3 + $0x18] sm:$0xff] %v139_v28 }
  0x99   :  { %v142_v33 = vmax.f32 %v116_v31, 0.0  ;;  %v146_v34 = vmax.f32 %v128_v32, 0.0 }
  0x9a   :  { %v100_v35 = vpop.f32.mrf.mxu0  ;;  %v109_v36 = vpop.f32.mrf.mxu1 }
  0x9b   :  { %155 = vst [vmem:[%s351_s3 + $0x30] sm:$0xff] %v142_v33  ;;  %v101_v37 = vadd.f32 %v206_v22, %v100_v35  ;;  %v110_v38 = vadd.f32 %v206_v22, %v109_v36 }
  0x9c   :  { %159 = vst [vmem:[%s351_s3 + $0x50] sm:$0xff] %v146_v34 }
  0x9d   :  { %v137_v39 = vmax.f32 %v101_v37, 0.0  ;;  %v140_v40 = vmax.f32 %v110_v38, 0.0 }
  0x9e   :  { %v118_v41 = vpop.f32.mrf.mxu2  ;;  %v130_v42 = vpop.f32.mrf.mxu3 }
  0x9f   :  { %v119_v43 = vadd.f32 %v206_v22, %v118_v41  ;;  %150 = vst [vmem:[%s351_s3 + $0x8] sm:$0xff] %v137_v39  ;;  %v131_v44 = vadd.f32 %v206_v22, %v130_v42 }
  0xa0   :  { %153 = vst [vmem:[%s351_s3 + $0x20] sm:$0xff] %v140_v40 }
  0xa1   :  { %v143_v45 = vmax.f32 %v119_v43, 0.0  ;;  %v147_v46 = vmax.f32 %v131_v44, 0.0 }
  0xa2   :  { %v103_v47 = vpop.f32.mrf.mxu0  ;;  %v112_v48 = vpop.f32.mrf.mxu1 }
  0xa3   :  { %156 = vst [vmem:[%s351_s3 + $0x38] sm:$0xff] %v143_v45  ;;  %v104_v49 = vadd.f32 %v206_v22, %v103_v47  ;;  %v113_v50 = vadd.f32 %v206_v22, %v112_v48 }
  0xa4   :  { %160 = vst [vmem:[%s351_s3 + $0x58] sm:$0xff] %v147_v46 }
  0xa5   :  { %v138_v51 = vmax.f32 %v104_v49, 0.0  ;;  %v141_v52 = vmax.f32 %v113_v50, 0.0 }
  0xa6   :  { %v121_v53 = vpop.f32.mrf.mxu2  ;;  %v133_v54 = vpop.f32.mrf.mxu3 }
  0xa7   :  { %v122_v55 = vadd.f32 %v206_v22, %v121_v53  ;;  %151 = vst [vmem:[%s351_s3 + $0x10] sm:$0xff] %v138_v51  ;;  %v134_v56 = vadd.f32 %v206_v22, %v133_v54 }
  0xa8   :  { %154 = vst [vmem:[%s351_s3 + $0x28] sm:$0xff] %v141_v52 }
  0xa9   :  { %v144_v57 = vmax.f32 %v122_v55, 0.0  ;;  %v148_v58 = vmax.f32 %v134_v56, 0.0 }
  0xab   :  { %157 = vst [vmem:[%s351_s3 + $0x40] sm:$0xff] %v144_v57 }
  0xac   :  { %161 = vst [vmem:[%s351_s3 + $0x60] sm:$0xff] %v148_v58 }
  0xae   :  { %v124_v59 = vpop.f32.mrf.mxu2 }
  0xaf   :  { %v125_v60 = vadd.f32 %v206_v22, %v124_v59 }
  0xb1   :  { %v145_v61 = vmax.f32 %v125_v60, 0.0 }
  0xb3   :  { %158 = vst [vmem:[%s351_s3 + $0x48] sm:$0xff] %v145_v61 }

// kernel: v2convnet_forward.5
= control target key start
LH: loop header
LB: loop body
LE: loop exit
PB: predicated region body
PF: predicated region fallthrough
CT: control target
= control target key end

     0   :  { %v370_v22 = vmov 2.0   ;;  %vm44_vm0 = vcmask 1041408   ;;  %s688_s0 = inlined_call_operand.vmem [shape: f32[2,2,512], index: 0, kind: input, shape index: {}]   ;;  %s689_s1 = inlined_call_operand.vmem [shape: f32[512,128], index: 1, kind: input, shape index: {}]   ;;  %s690_s2 = inlined_call_operand.vmem [shape: f32[1,128], index: 2, kind: input, shape index: {}]   ;;  %s691_s3 = inlined_call_operand.vmem [shape: f32[128,128], index: 3, kind: input, shape index: {}]   ;;  %s692_s4 = inlined_call_operand.vmem [shape: f32[1,128], index: 4, kind: input, shape index: {}]   ;;  %s693_s5 = inlined_call_operand.hbm [shape: f32[2,128], index: 5, kind: output, shape index: {}]  }
   0x1   :  { %v163_v0 = vld [vmem:[%s689_s1 + $0x178] sm:$0xff]  ;;  %v162_v2 = vld [vmem:[%s689_s1 + $0x170] sm:$0xff]  ;;  %v161_v6 = vld [vmem:[%s689_s1 + $0x168] sm:$0xff]  ;;  %342 = vrcp.f32 %v370_v22 }
   0x2   :  { %v131_v1 = vld [vmem:[%s689_s1 + $0x78] sm:$0xff]  ;;  %241 = vmatpush.msra.mxu2 %v163_v0  ;;  %v130_v4 = vld [vmem:[%s689_s1 + $0x70] sm:$0xff]  ;;  %v129_v8 = vld [vmem:[%s689_s1 + $0x68] sm:$0xff] }
   0x3   :  { %201 = vmatpush.msra.mxu0 %v131_v1  ;;  %v179_v3 = vld [vmem:[%s689_s1 + $0x1f8] sm:$0xff]  ;;  %v178_v7 = vld [vmem:[%s689_s1 + $0x1f0] sm:$0xff]  ;;  %v177_v10 = vld [vmem:[%s689_s1 + $0x1e8] sm:$0xff] }
   0x4   :  { %v147_v5 = vld [vmem:[%s689_s1 + $0xf8] sm:$0xff]  ;;  %261 = vmatpush.msra.mxu3 %v179_v3  ;;  %242 = vmatpush.msra.mxu2 %v162_v2  ;;  %v146_v9 = vld [vmem:[%s689_s1 + $0xf0] sm:$0xff]  ;;  %v160_v11 = vld [vmem:[%s689_s1 + $0x160] sm:$0xff] }
   0x5   :  { %221 = vmatpush.msra.mxu1 %v147_v5  ;;  %202 = vmatpush.msra.mxu0 %v130_v4  ;;  %v128_v12 = vld [vmem:[%s689_s1 + $0x60] sm:$0xff]  ;;  %v145_v13 = vld [vmem:[%s689_s1 + $0xe8] sm:$0xff]  ;;  %v159_v16 = vld [vmem:[%s689_s1 + $0x158] sm:$0xff] }
   0x6   :  { %262 = vmatpush.msra.mxu3 %v178_v7  ;;  %243 = vmatpush.msra.mxu2 %v161_v6  ;;  %v176_v14 = vld [vmem:[%s689_s1 + $0x1e0] sm:$0xff]  ;;  %v127_v17 = vld [vmem:[%s689_s1 + $0x58] sm:$0xff]  ;;  %v158_v20 = vld [vmem:[%s689_s1 + $0x150] sm:$0xff] }
   0x7   :  { %222 = vmatpush.msra.mxu1 %v146_v9  ;;  %203 = vmatpush.msra.mxu0 %v129_v8  ;;  %v144_v15 = vld [vmem:[%s689_s1 + $0xe0] sm:$0xff]  ;;  %v175_v18 = vld [vmem:[%s689_s1 + $0x1d8] sm:$0xff]  ;;  %v126_v21 = vld [vmem:[%s689_s1 + $0x50] sm:$0xff]  ;;  %v498_v33 = vpop.eup %342 }
   0x8   :  { %263 = vmatpush.msra.mxu3 %v177_v10  ;;  %244 = vmatpush.msra.mxu2 %v160_v11  ;;  %v143_v19 = vld [vmem:[%s689_s1 + $0xd8] sm:$0xff]  ;;  %v174_v23 = vld [vmem:[%s689_s1 + $0x1d0] sm:$0xff]  ;;  %v157_v25 = vld [vmem:[%s689_s1 + $0x148] sm:$0xff]  ;;  %v102_v42 = vmul.f32 2.0, %v498_v33 }
   0x9   :  { %223 = vmatpush.msra.mxu1 %v145_v13  ;;  %204 = vmatpush.msra.mxu0 %v128_v12  ;;  %v142_v24 = vld [vmem:[%s689_s1 + $0xd0] sm:$0xff]  ;;  %v125_v26 = vld [vmem:[%s689_s1 + $0x48] sm:$0xff]  ;;  %v156_v29 = vld [vmem:[%s689_s1 + $0x140] sm:$0xff] }
   0xa   :  { %264 = vmatpush.msra.mxu3 %v176_v14  ;;  %245 = vmatpush.msra.mxu2 %v159_v16  ;;  %v173_v27 = vld [vmem:[%s689_s1 + $0x1c8] sm:$0xff]  ;;  %v124_v30 = vld [vmem:[%s689_s1 + $0x40] sm:$0xff]  ;;  %v155_v34 = vld [vmem:[%s689_s1 + $0x138] sm:$0xff]  ;;  %v103_v53 = vsub.f32 1.0, %v102_v42 }
   0xb   :  { %224 = vmatpush.msra.mxu1 %v144_v15  ;;  %205 = vmatpush.msra.mxu0 %v127_v17  ;;  %v141_v28 = vld [vmem:[%s689_s1 + $0xc8] sm:$0xff]  ;;  %v172_v31 = vld [vmem:[%s689_s1 + $0x1c0] sm:$0xff]  ;;  %v123_v35 = vld [vmem:[%s689_s1 + $0x38] sm:$0xff] }
   0xc   :  { %265 = vmatpush.msra.mxu3 %v175_v18  ;;  %246 = vmatpush.msra.mxu2 %v158_v20  ;;  %v140_v32 = vld [vmem:[%s689_s1 + $0xc0] sm:$0xff]  ;;  %v171_v36 = vld [vmem:[%s689_s1 + $0x1b8] sm:$0xff]  ;;  %v154_v38 = vld [vmem:[%s689_s1 + $0x130] sm:$0xff]  ;;  %v104_v1 = vmul.f32 %v498_v33, %v103_v53 }
   0xd   :  { %225 = vmatpush.msra.mxu1 %v143_v19  ;;  %206 = vmatpush.msra.mxu0 %v126_v21  ;;  %v139_v37 = vld [vmem:[%s689_s1 + $0xb8] sm:$0xff]  ;;  %v122_v39 = vld [vmem:[%s689_s1 + $0x30] sm:$0xff]  ;;  %v153_v43 = vld [vmem:[%s689_s1 + $0x128] sm:$0xff] }
   0xe   :  { %266 = vmatpush.msra.mxu3 %v174_v23  ;;  %247 = vmatpush.msra.mxu2 %v157_v25  ;;  %v170_v40 = vld [vmem:[%s689_s1 + $0x1b0] sm:$0xff]  ;;  %v121_v44 = vld [vmem:[%s689_s1 + $0x28] sm:$0xff]  ;;  %v152_v45 = vld [vmem:[%s689_s1 + $0x120] sm:$0xff] }
   0xf   :  { %226 = vmatpush.msra.mxu1 %v142_v24  ;;  %207 = vmatpush.msra.mxu0 %v125_v26  ;;  %v138_v41 = vld [vmem:[%s689_s1 + $0xb0] sm:$0xff]  ;;  %v169_v46 = vld [vmem:[%s689_s1 + $0x1a8] sm:$0xff]  ;;  %v120_v48 = vld [vmem:[%s689_s1 + $0x20] sm:$0xff] }
  0x10   :  { %267 = vmatpush.msra.mxu3 %v173_v27  ;;  %248 = vmatpush.msra.mxu2 %v156_v29  ;;  %v137_v47 = vld [vmem:[%s689_s1 + $0xa8] sm:$0xff]  ;;  %v21_v49 = vld [vmem:[%s688_s0] sm:$0xff]  ;;  %v151_v54 = vld [vmem:[%s689_s1 + $0x118] sm:$0xff] }
  0x11   :  { %227 = vmatpush.msra.mxu1 %v141_v28  ;;  %208 = vmatpush.msra.mxu0 %v124_v30  ;;  %v22_v50 = vld [vmem:[%s688_s0 + $0x8] sm:$0xff]  ;;  %v168_v51 = vld [vmem:[%s689_s1 + $0x1a0] sm:$0xff]  ;;  %25 = vst [vmem:[#allocation1] ss:$4 sm:$0xff] %v21_v49  ;;  %v119_v55 = vld [vmem:[%s689_s1 + $0x18] sm:$0xff] }
  0x12   :  { %268 = vmatpush.msra.mxu3 %v172_v31  ;;  %249 = vmatpush.msra.mxu2 %v155_v34  ;;  %v136_v52 = vld [vmem:[%s689_s1 + $0xa0] sm:$0xff]  ;;  %v150_v56 = vld [vmem:[%s689_s1 + $0x110] sm:$0xff]  ;;  %31 = vst [vmem:[#allocation1 + $0x20] ss:$4 sm:$0xff] %v22_v50  ;;  %v167_v57 = vld [vmem:[%s689_s1 + $0x198] sm:$0xff] }
  0x13   :  { %228 = vmatpush.msra.mxu1 %v140_v32  ;;  %209 = vmatpush.msra.mxu0 %v123_v35  ;;  %v118_v58 = vld [vmem:[%s689_s1 + $0x10] sm:$0xff]  ;;  %v135_v59 = vld [vmem:[%s689_s1 + $0x98] sm:$0xff]  ;;  %v149_v60 = vld [vmem:[%s689_s1 + $0x108] sm:$0xff] }
  0x14   :  { %269 = vmatpush.msra.mxu3 %v171_v36  ;;  %250 = vmatpush.msra.mxu2 %v154_v38  ;;  %v166_v61 = vld [vmem:[%s689_s1 + $0x190] sm:$0xff]  ;;  %v117_v62 = vld [vmem:[%s689_s1 + $0x8] sm:$0xff]  ;;  %v148_v2 = vld [vmem:[%s689_s1 + $0x100] sm:$0xff] }
  0x15   :  { %229 = vmatpush.msra.mxu1 %v139_v37  ;;  %210 = vmatpush.msra.mxu0 %v122_v39  ;;  %v134_v63 = vld [vmem:[%s689_s1 + $0x90] sm:$0xff]  ;;  %v165_v0 = vld [vmem:[%s689_s1 + $0x188] sm:$0xff]  ;;  %v116_v3 = vld [vmem:[%s689_s1] sm:$0xff] }
  0x16   :  { %270 = vmatpush.msra.mxu3 %v170_v40  ;;  %251 = vmatpush.msra.mxu2 %v153_v43 }
  0x17   :  { %230 = vmatpush.msra.mxu1 %v138_v41  ;;  %211 = vmatpush.msra.mxu0 %v121_v44 }
  0x18   :  { %271 = vmatpush.msra.mxu3 %v169_v46  ;;  %252 = vmatpush.msra.mxu2 %v152_v45 }
  0x19   :  { %231 = vmatpush.msra.mxu1 %v137_v47  ;;  %212 = vmatpush.msra.mxu0 %v120_v48 }
  0x1a   :  { %272 = vmatpush.msra.mxu3 %v168_v51  ;;  %253 = vmatpush.msra.mxu2 %v151_v54 }
  0x1b   :  { %232 = vmatpush.msra.mxu1 %v136_v52  ;;  %213 = vmatpush.msra.mxu0 %v119_v55 }
  0x1c   :  { %273 = vmatpush.msra.mxu3 %v167_v57 }
  0x1d   :  { %233 = vmatpush.msra.mxu1 %v135_v59 }
  0x1e   :  { %10 = vsyncpa [#allocation3], 0  ;;  %254 = vmatpush.msra.mxu2 %v150_v56  ;;  %214 = vmatpush.msra.mxu0 %v118_v58  ;;  %v133_v4 = vld [vmem:[%s689_s1 + $0x88] sm:$0xff]  ;;  %v164_v5 = vld [vmem:[%s689_s1 + $0x180] sm:$0xff]  ;;  %v105_v11 = vadd.f32 %v498_v33, %v104_v1  ;;  %vm106_vm1 = vweird.f32 %v498_v33  ;;  %vm192_vm2 = vcmask 1041409   ;;  %s371_s6 = smov [#allocation2]  }
  0x1f   :  { %v132_v6 = vld [vmem:[%s689_s1 + $0x80] sm:$0xff]  ;;  %274 = vmatpush.msra.mxu3 %v166_v61  ;;  %234 = vmatpush.msra.mxu1 %v134_v63  ;;  %v28_v7 = vld.sshfl [vmem:[#allocation1 + $0x10] sm:$0xff pattern:$0x73625140]  ;;  %v296_v13 = vld [vmem:[%s691_s3 + $0x78] sm:$0xff]  ;;  %s329_s9 = sshll.u32 %s693_s5, 4  ;;  %s330_s9 = int_to_ptr.hbm [resolvable:$true] %s329_s9 }
  0x20   :  { %v26_v8 = vld.sshfl [vmem:[#allocation1] sm:$0xff pattern:$0x73625140]  ;;  %255 = vmatpush.msra.mxu2 %v149_v60  ;;  %215 = vmatpush.msra.mxu0 %v117_v62  ;;  %v34_v9 = vld.sshfl [vmem:[#allocation1 + $0x30] sm:$0xff pattern:$0x73625140]  ;;  %v620_v28 = vsel %vm106_vm1, %v498_v33, %v105_v11 }
  0x21   :  { %v59_v10 = vsel %vm44_vm0, %v28_v7, 0.0  ;;  %v45_v12 = vsel %vm44_vm0, %v26_v8, 0.0  ;;  %275 = vmatpush.msra.mxu3 %v165_v0  ;;  %v87_v15 = vsel %vm44_vm0, %v34_v9, 0.0  ;;  %235 = vmatpush.msra.mxu1 %v133_v4  ;;  %v32_v16 = vld.sshfl [vmem:[#allocation1 + $0x20] sm:$0xff pattern:$0x73625140] }
  0x22   :  { %v60_v14 = vrot.slane %v59_v10, 4  ;;  %v46_v17 = vrot.slane %v45_v12, 4  ;;  %256 = vmatpush.msra.mxu2 %v148_v2  ;;  %v88_v18 = vrot.slane %v87_v15, 4  ;;  %216 = vmatpush.msra.mxu0 %v116_v3  ;;  %v73_v19 = vsel %vm44_vm0, %v32_v16, 0.0  ;;  %v295_v26 = vld [vmem:[%s691_s3 + $0x70] sm:$0xff]  ;;  %v294_v32 = vld [vmem:[%s691_s3 + $0x68] sm:$0xff] }
  0x23   :  { %v29_v20 = vld.sshfl [vmem:[#allocation1 + $0x18] sm:$0xff pattern:$0x73625140]  ;;  %276 = vmatpush.msra.mxu3 %v164_v5  ;;  %v74_v23 = vrot.slane %v73_v19, 4  ;;  %236 = vmatpush.msra.mxu1 %v132_v6  ;;  %v293_v46 = vld [vmem:[%s691_s3 + $0x60] sm:$0xff]  ;;  %v291_v0 = vld [vmem:[%s691_s3 + $0x50] sm:$0xff] }
  0x24   :  { %v61_v21 = vadd.f32 %v60_v14, %v59_v10  ;;  %v47_v22 = vadd.f32 %v46_v17, %v45_v12  ;;  %v35_v24 = vld.sshfl [vmem:[#allocation1 + $0x38] sm:$0xff pattern:$0x73625140]  ;;  %v66_v25 = vsel %vm44_vm0, %v29_v20, 0.0  ;;  %v89_v27 = vadd.f32 %v88_v18, %v87_v15  ;;  %301 = vmatpush.msrb.mxu0 %v296_v13  ;;  %v290_v9 = vld [vmem:[%s691_s3 + $0x48] sm:$0xff]  ;;  %v289_v20 = vld [vmem:[%s691_s3 + $0x40] sm:$0xff] }
  0x25   :  { %v67_v29 = vrot.slane %v66_v25, 4  ;;  %v94_v30 = vsel %vm44_vm0, %v35_v24, 0.0  ;;  %v27_v31 = vld.sshfl [vmem:[#allocation1 + $0x8] sm:$0xff pattern:$0x73625140]  ;;  %v75_v36 = vadd.f32 %v74_v23, %v73_v19  ;;  %v292_v55 = vld [vmem:[%s691_s3 + $0x58] sm:$0xff] }
  0x26   :  { %v62_v34 = vrot.slane %v61_v21, 2  ;;  %v48_v35 = vrot.slane %v47_v22, 2  ;;  %v95_v37 = vrot.slane %v94_v30, 4  ;;  %v33_v38 = vld.sshfl [vmem:[#allocation1 + $0x28] sm:$0xff pattern:$0x73625140]  ;;  %302 = vmatpush.msrb.mxu0 %v295_v26 }
  0x27   :  { %v90_v39 = vrot.slane %v89_v27, 2  ;;  %v68_v40 = vadd.f32 %v67_v29, %v66_v25  ;;  %v52_v33 = vsel %vm44_vm0, %v27_v31, 0.0  ;;  %v80_v41 = vsel %vm44_vm0, %v33_v38, 0.0  ;;  %v288_v25 = vld [vmem:[%s691_s3 + $0x38] sm:$0xff]  ;;  %v340_v38 = vld [vmem:[%s690_s2] ss:$0 sm:$0xff] }
  0x28   :  { %v63_v42 = vadd.f32 %v62_v34, %v61_v21  ;;  %v49_v43 = vadd.f32 %v48_v35, %v47_v22  ;;  %v76_v44 = vrot.slane %v75_v36, 2  ;;  %v96_v45 = vadd.f32 %v95_v37, %v94_v30  ;;  %303 = vmatpush.msrb.mxu0 %v294_v32  ;;  %v287_v30 = vld [vmem:[%s691_s3 + $0x30] sm:$0xff]  ;;  %v286_v32 = vld [vmem:[%s691_s3 + $0x28] sm:$0xff]  ;;  %v285_v34 = vld [vmem:[%s691_s3 + $0x20] sm:$0xff] }
  0x29   :  { %v91_v47 = vadd.f32 %v90_v39, %v89_v27  ;;  %v69_v48 = vrot.slane %v68_v40, 2  ;;  %v53_v49 = vrot.slane %v52_v33, 4  ;;  %v81_v50 = vrot.slane %v80_v41, 4  ;;  %v283_v35 = vld [vmem:[%s691_s3 + $0x10] sm:$0xff]  ;;  %v281_v37 = vld [vmem:[%s691_s3] sm:$0xff] }
  0x2a   :  { %v64_v51 = vrot.slane %v63_v42, 1  ;;  %v50_v52 = vrot.slane %v49_v43, 1  ;;  %v77_v53 = vadd.f32 %v76_v44, %v75_v36  ;;  %v97_v54 = vrot.slane %v96_v45, 2  ;;  %304 = vmatpush.msrb.mxu0 %v293_v46  ;;  %v282_v36 = vld [vmem:[%s691_s3 + $0x8] sm:$0xff]  ;;  %v341_v46 = vld [vmem:[%s692_s4] ss:$0 sm:$0xff] }
  0x2b   :  { %v92_v56 = vrot.slane %v91_v47, 1  ;;  %v70_v57 = vadd.f32 %v69_v48, %v68_v40  ;;  %v54_v58 = vadd.f32 %v53_v49, %v52_v33  ;;  %v82_v59 = vadd.f32 %v81_v50, %v80_v41 }
  0x2c   :  { %v65_v60 = vadd.f32 %v64_v51, %v63_v42  ;;  %v51_v61 = vadd.f32 %v50_v52, %v49_v43  ;;  %v78_v62 = vrot.slane %v77_v53, 1  ;;  %v98_v63 = vadd.f32 %v97_v54, %v96_v45  ;;  %305 = vmatpush.msrb.mxu0 %v292_v55 }
  0x2d   :  { %v93_v1 = vadd.f32 %v92_v56, %v91_v47  ;;  %v71_v2 = vrot.slane %v70_v57, 1  ;;  %v55_v3 = vrot.slane %v54_v58, 2  ;;  %v83_v4 = vrot.slane %v82_v59, 2 }
  0x2e   :  { %v110_v5 = vmul.f32 %v620_v28, %v65_v60  ;;  %v79_v6 = vadd.f32 %v78_v62, %v77_v53  ;;  %v108_v7 = vmul.f32 %v620_v28, %v51_v61  ;;  %v99_v8 = vrot.slane %v98_v63, 1  ;;  %306 = vmatpush.msrb.mxu0 %v291_v0 }
  0x2f   :  { %v114_v10 = vmul.f32 %v620_v28, %v93_v1  ;;  %v72_v11 = vadd.f32 %v71_v2, %v70_v57  ;;  %v56_v12 = vadd.f32 %v55_v3, %v54_v58  ;;  %v84_v13 = vadd.f32 %v83_v4, %v82_v59 }
  0x30   :  { %v112_v14 = vmul.f32 %v620_v28, %v79_v6  ;;  %v100_v15 = vadd.f32 %v99_v8, %v98_v63  ;;  %307 = vmatpush.msrb.mxu0 %v290_v9 }
  0x31   :  { %v195_v16 = vsel %vm192_vm2, %v114_v10, %v110_v5  ;;  %v111_v17 = vmul.f32 %v620_v28, %v72_v11  ;;  %v57_v18 = vrot.slane %v56_v12, 1  ;;  %v85_v19 = vrot.slane %v84_v13, 1 }
  0x32   :  { %257 = vmatmul.f32.vlgmr.msra.gmra.mxu2 %v195_v16  ;;  %v193_v21 = vsel %vm192_vm2, %v112_v14, %v108_v7  ;;  %v115_v22 = vmul.f32 %v620_v28, %v100_v15  ;;  %308 = vmatpush.msrb.mxu0 %v289_v20 }
  0x33   :  { %217 = vmatmul.f32.vlgmr.msra.gmra.mxu0 %v193_v21  ;;  %v58_v23 = vadd.f32 %v57_v18, %v56_v12  ;;  %v86_v24 = vadd.f32 %v85_v19, %v84_v13 }
  0x34   :  { %v196_v26 = vsel %vm192_vm2, %v115_v22, %v111_v17  ;;  %309 = vmatpush.msrb.mxu0 %v288_v25 }
  0x35   :  { %277 = vmatmul.f32.vlgmr.msra.gmra.mxu3 %v196_v26  ;;  %v109_v27 = vmul.f32 %v620_v28, %v58_v23  ;;  %v113_v29 = vmul.f32 %v620_v28, %v86_v24  ;;  %v284_v28 = vld [vmem:[%s691_s3 + $0x18] sm:$0xff]  ;;  %s327_s3 = sshll.u32 %s371_s6, 4  ;;  %s328_s3 = int_to_ptr.vmem [resolvable:$true] %s327_s3 }
  0x36   :  { %310 = vmatpush.msrb.mxu0 %v287_v30 }
  0x37   :  { %v194_v31 = vsel %vm192_vm2, %v113_v29, %v109_v27 }
  0x38   :  { %237 = vmatmul.f32.vlgmr.msra.gmra.mxu1 %v194_v31  ;;  %311 = vmatpush.msrb.mxu0 %v286_v32 }
  0x3a   :  { %312 = vmatpush.msrb.mxu0 %v285_v34 }
  0x3c   :  { %313 = vmatpush.msrb.mxu0 %v284_v28 }
  0x3e   :  { %314 = vmatpush.msrb.mxu0 %v283_v35 }
  0x40   :  { %315 = vmatpush.msrb.mxu0 %v282_v36 }
  0x42   :  { %316 = vmatpush.msrb.mxu0 %v281_v37 }
  0xb0   :  { %v218_v39 = vpop.f32.mrf.mxu0 }
  0xb1   :  { %v219_v40 = vadd.f32 %v340_v38, %v218_v39 }
  0xb5   :  { %v238_v33 = vpop.f32.mrf.mxu1  ;;  %v258_v41 = vpop.f32.mrf.mxu2 }
  0xb6   :  { %v239_v42 = vadd.f32 %v238_v33, %v219_v40 }
  0xb8   :  { %v259_v43 = vadd.f32 %v258_v41, %v239_v42  ;;  %v278_v44 = vpop.f32.mrf.mxu3 }
  0xba   :  { %v279_v45 = vadd.f32 %v278_v44, %v259_v43 }
  0xbc   :  { %317 = vmatmul.f32.vlgmr.msrb.gmra.mxu0 %v279_v45 }
 0x139   :  { %v318_v47 = vpop.f32.mrf.mxu0 }
 0x13a   :  { %v319_v48 = vadd.f32 %v341_v46, %v318_v47 }
 0x13c   :  { %321 = vst [vmem:[#allocation2] sm:$0x3] %v319_v48 }
 0x13d   :  { %332 = dma.vmem_to_hbm [thread:$0]  %s328_s3, 32, %s330_s9, [#allocation3]  }
 0x13e   :  { %368 = dma.done.wait [#allocation3], 32  }
 0x13f   :  { %369 = vsyncadd [#allocation3], 4294967264 }
 0x140   :  { %337 = vsyncpa [#allocation3], 1 }

</bundles_post_ra>
